<compile_context>
chip_gen: v6e
topology: v6e:2x2x1
jax: 0.10.0
libtpu: 0.0.40
codegen_flags: <defaults>
</compile_context>

<pallas_src>
import functools

import jax
import jax.numpy as jnp
from jax.experimental import pallas as pl
from jax.experimental.pallas import tpu as pltpu


def _layernorm_kernel(x_ref, alpha_ref, bias_ref, o_ref, *, eps: float):
    # x_ref: (tile_rows, features); alpha_ref / bias_ref: (1, features) f32.
    x = x_ref[...].astype(jnp.float32)  # no-op when the input is already f32
    n = x.shape[-1]
    mean = jnp.mean(x, axis=-1, keepdims=True)
    xc = x - mean
    # torch.Tensor.std default: unbiased variance (ddof=1); eps is added to std.
    # features == 1 is undefined for unbiased std (torch yields NaN); only the
    # Python-level divide-by-zero is guarded here.
    bessel = n - 1 if n > 1 else 1
    var = jnp.sum(xc * xc, axis=-1, keepdims=True) * (1.0 / bessel)
    std = jnp.sqrt(var)
    # One reciprocal per row instead of `features` divides per row. Exact mode
    # keeps results bit-close to the torch reference.
    inv = pl.reciprocal(std + eps, approx=False)
    o_ref[...] = (xc * inv * alpha_ref[...] + bias_ref[...]).astype(o_ref.dtype)


def _pick_tile_rows(rows, features, itemsize):
    # dtype-specific sublane packing: 8 (f32), 16 (bf16/f16), 32 (int8/fp8).
    sub = max(8, 32 // max(1, itemsize))
    # HBM-bound kernel: ~2 MiB input tiles already sit at ~85% of roofline;
    # larger tiles shrink the grid (killing DMA overlap) and blow up the f32
    # temporaries' VMEM footprint for <1% bandwidth gain.
    target_tile_bytes = 2 << 20
    t = target_tile_bytes // max(1, features * itemsize)
    # Keep >= 8 grid steps when the input is big enough: >= 4 steps per
    # TensorCore on v7x megacore, and real prefetch/writeback pipelining on
    # single-TC v5e/v6e. Per-step overhead is only ~0.35 us.
    if rows >= 8 * sub:
        t = min(t, pl.cdiv(rows, 8))
    t = max(sub, (t // sub) * sub)
    if t >= rows:
        t = rows  # full-extent block (== array dim) is always layout-legal
    return t, sub


def _vmem_limit_bytes(tile_rows, features, itemsize):
    in_tile = tile_rows * features * itemsize     # input block, native dtype
    f32_tile = tile_rows * features * 4           # in-kernel f32 temporaries
    params = 2 * features * 4                     # alpha + bias (f32, resident)
    # 2x double-buffered input + 2x double-buffered output (native dtype),
    # ~4 f32 tiles of intermediates (cast, xc, xc*xc, scaled result),
    # resident params, plus fixed headroom for compiler-internal scratch.
    footprint = 4 * in_tile + 4 * f32_tile + 2 * params
    limit = footprint + (8 << 20)
    # Never below the 16 MiB v5e default scoped limit; never above 48 MiB so we
    # keep >= 16 MiB headroom under v7x's 64 MiB physical VMEM per TC.
    return min(max(limit, 16 << 20), 48 << 20)


def layer_normalization(x, alpha, bias, eps: float = 1e-6, tile_rows=None):
    """x: (..., features). alpha, bias: (features,). Returns same shape/dtype as x."""
    orig_shape = x.shape
    features = orig_shape[-1]
    rows = 1
    for d in orig_shape[:-1]:
        rows *= d
    x2 = x.reshape(rows, features)

    itemsize = jnp.dtype(x.dtype).itemsize
    auto_tile, _ = _pick_tile_rows(rows, features, itemsize)
    if tile_rows is None:
        tile_rows = auto_tile

    # Hoist the parameter f32 cast out of the per-step kernel path (JAX does
    # not CSE it, so it would otherwise re-run every grid iteration).
    alpha2 = alpha.reshape(1, features).astype(jnp.float32)
    bias2 = bias.reshape(1, features).astype(jnp.float32)

    kernel = functools.partial(_layernorm_kernel, eps=eps)

    grid = (pl.cdiv(rows, tile_rows),)
    vmem_limit = _vmem_limit_bytes(tile_rows, features, itemsize)

    out = pl.pallas_call(
        kernel,
        out_shape=jax.ShapeDtypeStruct((rows, features), x.dtype),
        grid_spec=pltpu.PrefetchScalarGridSpec(
            num_scalar_prefetch=0,
            grid=grid,
            in_specs=[
                pl.BlockSpec((tile_rows, features), lambda i: (i, 0)),
                pl.BlockSpec((1, features), lambda i: (0, 0)),  # alpha (constant block)
                pl.BlockSpec((1, features), lambda i: (0, 0)),  # bias  (constant block)
            ],
            out_specs=pl.BlockSpec((tile_rows, features), lambda i: (i, 0)),
        ),
        compiler_params=pltpu.CompilerParams(
            dimension_semantics=("parallel",),
            vmem_limit_bytes=vmem_limit,
        ),
    )(x2, alpha2, bias2)

    return out.reshape(orig_shape)


if __name__ == "__main__":
    def ref_layernorm(x, alpha, bias, eps=1e-6):
        n = x.shape[-1]
        mean = jnp.mean(x, axis=-1, keepdims=True)
        std = jnp.sqrt(jnp.sum((x - mean) ** 2, axis=-1, keepdims=True) / (n - 1))
        return alpha * (x - mean) / (std + eps) + bias

    key = jax.random.PRNGKey(0)

    # Case 1: shapes implied by the transformer module: (batch, seq, hidden)
    batch, seq, hidden = 2, 8, 32
    x = jax.random.normal(key, (batch, seq, hidden), dtype=jnp.float32)
    # Deterministic parameter init matching nn.Parameter(ones / zeros)
    alpha = jnp.ones((hidden,), dtype=jnp.float32)
    bias = jnp.zeros((hidden,), dtype=jnp.float32)

    out = jax.block_until_ready(layer_normalization(x, alpha, bias, eps=1e-6))
    ref = ref_layernorm(x, alpha, bias, eps=1e-6)
    assert jnp.allclose(out, ref, atol=1e-5, rtol=1e-5), "mismatch vs reference (case 1)"

    # Case 2: 128-wide lanes, rows not a multiple of 8 -> full-extent row block.
    x2 = jax.random.normal(jax.random.PRNGKey(1), (3, 5, 128), dtype=jnp.float32)
    a2 = jax.random.normal(jax.random.PRNGKey(2), (128,), dtype=jnp.float32)
    b2 = jax.random.normal(jax.random.PRNGKey(3), (128,), dtype=jnp.float32)
    out2 = jax.block_until_ready(layer_normalization(x2, a2, b2, eps=1e-6))
    ref2 = ref_layernorm(x2, a2, b2, eps=1e-6)
    assert jnp.allclose(out2, ref2, atol=1e-5, rtol=1e-5), "mismatch vs reference (case 2)"

    # Case 3: enough rows to get a multi-step grid with a masked partial
    # trailing block (exercises the pipelined path + trailing-block masking).
    x3 = jax.random.normal(jax.random.PRNGKey(4), (4, 37, 128), dtype=jnp.float32)
    a3 = jax.random.normal(jax.random.PRNGKey(5), (128,), dtype=jnp.float32)
    b3 = jax.random.normal(jax.random.PRNGKey(6), (128,), dtype=jnp.float32)
    out3 = jax.block_until_ready(layer_normalization(x3, a3, b3, eps=1e-6))
    ref3 = ref_layernorm(x3, a3, b3, eps=1e-6)
    assert jnp.allclose(out3, ref3, atol=1e-5, rtol=1e-5), "mismatch vs reference (case 3)"

    print("KERNEL_OK")
</pallas_src>

<mosaic_0001>
module attributes {stable_mosaic.version = 11 : i64} {
  func.func @_layernorm_kernel(%arg0: i32, %arg1: memref<16x32xf32, #tpu.memory_space<vmem>>, %arg2: memref<1x32xf32, #tpu.memory_space<vmem>>, %arg3: memref<1x32xf32, #tpu.memory_space<vmem>>, %arg4: memref<16x32xf32, #tpu.memory_space<vmem>>) attributes {dimension_semantics = [#tpu.dimension_semantics<parallel>], iteration_bounds = array<i64: 1>, scalar_prefetch = 0 : i64, scratch_operands = 0 : i64, tpu.core_type = #tpu.core_type<tc>, window_params = [{transform_indices = @transform_0, window_bounds = array<i64: 16, 32>}, {pipeline_mode = #tpu.pipeline_mode<synchronous>, transform_indices = @transform_1, window_bounds = array<i64: 1, 32>}, {pipeline_mode = #tpu.pipeline_mode<synchronous>, transform_indices = @transform_2, window_bounds = array<i64: 1, 32>}, {transform_indices = @transform_3, window_bounds = array<i64: 16, 32>}]} {
    %c0 = arith.constant 0 : index
    %c0_0 = arith.constant 0 : index
    %0 = vector.load %arg1[%c0, %c0_0] : memref<16x32xf32, #tpu.memory_space<vmem>>, vector<16x32xf32>
    %cst = arith.constant dense<0.000000e+00> : vector<16xf32>
    %1 = vector.multi_reduction <add>, %0, %cst [1] : vector<16x32xf32> to vector<16xf32>
    %2 = vector.shape_cast %1 : vector<16xf32> to vector<16x1xf32>
    %cst_1 = arith.constant 3.200000e+01 : f32
    %3 = vector.broadcast %cst_1 : f32 to vector<16x1xf32>
    %4 = arith.divf %2, %3 : vector<16x1xf32>
    %5 = vector.broadcast %4 : vector<16x1xf32> to vector<16x32xf32>
    %6 = arith.subf %0, %5 : vector<16x32xf32>
    %7 = arith.mulf %6, %6 : vector<16x32xf32>
    %cst_2 = arith.constant dense<0.000000e+00> : vector<16xf32>
    %8 = vector.multi_reduction <add>, %7, %cst_2 [1] : vector<16x32xf32> to vector<16xf32>
    %9 = vector.shape_cast %8 : vector<16xf32> to vector<16x1xf32>
    %cst_3 = arith.constant 0.0322580636 : f32
    %10 = vector.broadcast %cst_3 : f32 to vector<16x1xf32>
    %11 = arith.mulf %9, %10 : vector<16x1xf32>
    %12 = math.sqrt %11 : vector<16x1xf32>
    %cst_4 = arith.constant 9.99999997E-7 : f32
    %13 = vector.broadcast %cst_4 : f32 to vector<16x1xf32>
    %14 = arith.addf %12, %13 : vector<16x1xf32>
    %15 = tpu.reciprocal %14 : vector<16x1xf32> -> vector<16x1xf32>
    %16 = vector.broadcast %15 : vector<16x1xf32> to vector<16x32xf32>
    %17 = arith.mulf %6, %16 : vector<16x32xf32>
    %c0_5 = arith.constant 0 : index
    %c0_6 = arith.constant 0 : index
    %18 = vector.load %arg2[%c0_5, %c0_6] : memref<1x32xf32, #tpu.memory_space<vmem>>, vector<1x32xf32>
    %19 = vector.broadcast %18 : vector<1x32xf32> to vector<16x32xf32>
    %20 = arith.mulf %17, %19 : vector<16x32xf32>
    %c0_7 = arith.constant 0 : index
    %c0_8 = arith.constant 0 : index
    %21 = vector.load %arg3[%c0_7, %c0_8] : memref<1x32xf32, #tpu.memory_space<vmem>>, vector<1x32xf32>
    %22 = vector.broadcast %21 : vector<1x32xf32> to vector<16x32xf32>
    %23 = arith.addf %20, %22 : vector<16x32xf32>
    %c0_9 = arith.constant 0 : index
    %c0_10 = arith.constant 0 : index
    %24 = vector.load %arg4[%c0_9, %c0_10] : memref<16x32xf32, #tpu.memory_space<vmem>>, vector<16x32xf32>
    tpu.vector_store %arg4[%c0_9, %c0_10], %23 {strides = array<i32>} : memref<16x32xf32, #tpu.memory_space<vmem>>, vector<16x32xf32>,
    return
  }
  func.func @transform_0(%arg0: i32) -> (i32, i32) {
    %c0_i32 = arith.constant 0 : i32
    %c0_i32_0 = arith.constant 0 : i32
    return %arg0, %c0_i32 : i32, i32
  }
  func.func @transform_1(%arg0: i32) -> (i32, i32) {
    %c0_i32 = arith.constant 0 : i32
    %c0_i32_0 = arith.constant 0 : i32
    %c0_i32_1 = arith.constant 0 : i32
    return %c0_i32, %c0_i32_0 : i32, i32
  }
  func.func @transform_2(%arg0: i32) -> (i32, i32) {
    %c0_i32 = arith.constant 0 : i32
    %c0_i32_0 = arith.constant 0 : i32
    %c0_i32_1 = arith.constant 0 : i32
    return %c0_i32, %c0_i32_0 : i32, i32
  }
  func.func @transform_3(%arg0: i32) -> (i32, i32) {
    %c0_i32 = arith.constant 0 : i32
    %c0_i32_0 = arith.constant 0 : i32
    return %arg0, %c0_i32 : i32, i32
  }
}

</mosaic_0001>

<bundles_post_ra>
// kernel: tpu_custom_call.1
= control target key start
LH: loop header
LB: loop body
LE: loop exit
PB: predicated region body
PF: predicated region fallthrough
CT: control target
= control target key end

     0   :  { %8 = vsyncpa [#allocation3], 0  ;;  %s216_s0 = inlined_call_operand.hbm [shape: f32[16,32], index: 0, kind: input, shape index: {}]   ;;  %s217_s1 = inlined_call_operand.vmem [shape: f32[1,32], index: 1, kind: input, shape index: {}]   ;;  %s218_s2 = inlined_call_operand.vmem [shape: f32[1,32], index: 2, kind: input, shape index: {}]   ;;  %s219_s3 = inlined_call_operand.hbm [shape: f32[16,32], index: 3, kind: output, shape index: {}]  }
   0x1   :  { %9 = vsyncpa [#allocation4], 0  ;;  %s168_s12 = smov [#allocation2]  }
   0x2   :  { %s15_s13 = sshll.u32 %s168_s12, 4  ;;  %s16_s13 = int_to_ptr.vmem [resolvable:$true] %s15_s13 }
   0x3   :  { %s132_s14 = scalar_lea.vmem %s16_s13, 256  ;;  %p137_p1 = scmp.lt.s32.totalorder %s16_s13, %s16_s13 }
   0x4   :  { %p133_p0 = scmp.ne.s32.totalorder %s16_s13, %s132_s14  ;;  %p138_p2 = scmp.lt.s32.totalorder %s132_s14, %s132_s14 }
   0x6   :  { %p139_p3 = por %p138_p2, %p137_p1 }
   0x8   :  { %p140_p4 = pnand %p139_p3, %p133_p0 }
   0xa   :  { %143 = shalt.err (!%p140_p4)
}
   0xb   :  { %s169_s15 = smov 128   ;;  %s170_s16 = smov 8  }
   0xc   :  { %21 = dma.hbm_to_vmem [thread:$0]  %s216_s0, 256, %s16_s13, [#allocation3], %s169_s15, %s169_s15, %s170_s16  }
   0xd   :  { %164 = dma.done.wait [#allocation3], 256  }
   0xe   :  { %165 = vsyncadd [#allocation3], 4294967040  ;;  %vm31_vm0 = vcmask 261120   ;;  %v29_v0 = vld [vmem:[#allocation2] sm:$0xff]  ;;  %v30_v1 = vld [vmem:[#allocation2 + $0x8] sm:$0xff]  ;;  %s171_s22 = smov [#allocation5]  }
   0xf   :  { %v32_v2 = vsel %vm31_vm0, %v29_v0, 0.0  ;;  %v35_v3 = vsel %vm31_vm0, %v30_v1, 0.0  ;;  %v110_v31 = vld [vmem:[%s217_s1] ss:$0 sm:$0xff]  ;;  %s98_s23 = sshll.u32 %s171_s22, 4  ;;  %s99_s23 = int_to_ptr.vmem [resolvable:$true] %s98_s23 }
  0x10   :  { %33 = vadd.xlane.f32.xlu0 %v32_v2  ;;  %v111_v33 = vld [vmem:[%s218_s2] ss:$0 sm:$0xff]  ;;  %s144_s24 = scalar_lea.vmem %s99_s23, 256  ;;  %p149_p6 = scmp.lt.s32.totalorder %s99_s23, %s99_s23 }
  0x11   :  { %p145_p5 = scmp.ne.s32.totalorder %s99_s23, %s144_s24  ;;  %p150_p7 = scmp.lt.s32.totalorder %s144_s24, %s144_s24 }
  0x13   :  { %p151_p8 = por %p150_p7, %p149_p6 }
  0x14   :  { %36 = vadd.xlane.f32.xlu0 %v35_v3 }
  0x15   :  { %p152_p9 = pnand %p151_p8, %p145_p5 }
  0x99   :  { %v34_v4 = vpop.xlane.xlu0 %33 }
  0x9a   :  { %v39_v5 = vmul.f32 0.03125, %v34_v4 }
  0x9c   :  { %v41_v6 = vsub.f32 %v29_v0, %v39_v5 }
  0x9d   :  { %v37_v7 = vpop.xlane.xlu0 %36 }
  0x9e   :  { %v40_v8 = vmul.f32 0.03125, %v37_v7  ;;  %v43_v9 = vmul.f32 %v41_v6, %v41_v6 }
  0xa0   :  { %v42_v10 = vsub.f32 %v30_v1, %v40_v8  ;;  %v45_v11 = vsel %vm31_vm0, %v43_v9, 0.0 }
  0xa1   :  { %46 = vadd.xlane.f32.xlu1 %v45_v11 }
  0xa2   :  { %v44_v12 = vmul.f32 %v42_v10, %v42_v10 }
  0xa4   :  { %v48_v13 = vsel %vm31_vm0, %v44_v12, 0.0 }
  0xa5   :  { %49 = vadd.xlane.f32.xlu1 %v48_v13 }
 0x12a   :  { %v47_v14 = vpop.xlane.xlu1 %46 }
 0x12b   :  { %v51_v15 = vmul.f32 0.032258064, %v47_v14 }
 0x12d   :  { %116 = vrsqrt.f32 %v51_v15  ;;  %vm55_vm1 = vcmp.eq.f32.partialorder %v51_v15, inf  ;;  %v58_v20 = vand.u32 2147483648, %v51_v15  ;;  %vm57_vm2 = vcmp.eq.f32.partialorder %v51_v15, 0.0 }
 0x12e   :  { %v50_v16 = vpop.xlane.xlu1 %49 }
 0x12f   :  { %v52_v17 = vmul.f32 0.032258064, %v50_v16 }
 0x131   :  { %118 = vrsqrt.f32 %v52_v17  ;;  %vm62_vm3 = vcmp.eq.f32.partialorder %v52_v17, inf  ;;  %v65_v26 = vand.u32 2147483648, %v52_v17  ;;  %vm64_vm4 = vcmp.eq.f32.partialorder %v52_v17, 0.0 }
 0x13a   :  { %v117_v18 = vpop.eup %116 }
 0x13b   :  { %v54_v19 = vmul.f32 %v117_v18, %v51_v15 }
 0x13d   :  { %v56_v21 = vsel %vm55_vm1, %v51_v15, %v54_v19 }
 0x13e   :  { %v119_v22 = vpop.eup %118  ;;  %v59_v23 = vsel %vm57_vm2, %v58_v20, %v56_v21 }
 0x13f   :  { %v67_v24 = vadd.f32 1e-06, %v59_v23  ;;  %v61_v25 = vmul.f32 %v119_v22, %v52_v17 }
 0x141   :  { %120 = vrcp.f32 %v67_v24  ;;  %v63_v27 = vsel %vm62_vm3, %v52_v17, %v61_v25 }
 0x142   :  { %v66_v28 = vsel %vm64_vm4, %v65_v26, %v63_v27 }
 0x143   :  { %v68_v29 = vadd.f32 1e-06, %v66_v28 }
 0x145   :  { %122 = vrcp.f32 %v68_v29 }
 0x14e   :  { %v121_v30 = vpop.eup %120 }
 0x14f   :  { %v71_v32 = vmul.f32 %v121_v30, %v41_v6 }
 0x151   :  { %v80_v34 = vmul.f32 %v110_v31, %v71_v32 }
 0x152   :  { %v123_v35 = vpop.eup %122 }
 0x153   :  { %v72_v36 = vmul.f32 %v123_v35, %v42_v10  ;;  %v89_v37 = vadd.f32 %v111_v33, %v80_v34 }
 0x155   :  { %v81_v38 = vmul.f32 %v110_v31, %v72_v36  ;;  %91 = vst.msk [vmem:[#allocation5] sm:$0xff] %vm31_vm0, %v89_v37 }
 0x157   :  { %v90_v39 = vadd.f32 %v111_v33, %v81_v38 }
 0x159   :  { %92 = vst.msk [vmem:[#allocation5 + $0x8] sm:$0xff] %vm31_vm0, %v90_v39 }
 0x15a   :  { %155 = shalt.err (!%p152_p9)
}
 0x15b   :  { %104 = dma.vmem_to_hbm [thread:$0]  %s99_s23, 256, %s219_s3, [#allocation4], %s169_s15, %s169_s15, %s170_s16  }
 0x15c   :  { %166 = dma.done.wait [#allocation4], 256  }
 0x15d   :  { %167 = vsyncadd [#allocation4], 4294967040 }
 0x15e   :  { %108 = vsyncpa [#allocation3], 1 }
 0x15f   :  { %109 = vsyncpa [#allocation4], 1 }

</bundles_post_ra>
